<compile_context>
chip_gen: v6e
topology: v6e:2x2x1
jax: 0.10.0
libtpu: 0.0.40
codegen_flags: <defaults>
</compile_context>

<pallas_src>
from functools import partial

import jax
import jax.numpy as jnp
import numpy as np
from jax.experimental import pallas as pl
from jax.experimental.pallas import tpu as pltpu


# ----------------------------- Pallas kernel ------------------------------

def _mlpkan_kernel(x_ref, w1_ref, b1_ref, w2_ref, b2_ref, out_ref):
    """Fused Linear -> ReLU -> (Dropout: identity) -> Linear for one batch tile.

    x_ref:  [TB, F]  f32 (producer dtype; cast to bf16 here)
    w1_ref: [F,  H]  bf16  (transposed PyTorch weight)
    b1_ref: [1,  H]  f32
    w2_ref: [H,  C]  bf16  (transposed PyTorch weight)
    b2_ref: [1,  C]  f32
    out:    [TB, C]  f32
    """
    x = x_ref[...].astype(jnp.bfloat16)
    h = jnp.dot(x, w1_ref[...], preferred_element_type=jnp.float32) + b1_ref[...]
    h = jnp.maximum(h, 0.0)
    out_ref[...] = (
        jnp.dot(h.astype(jnp.bfloat16), w2_ref[...],
                preferred_element_type=jnp.float32)
        + b2_ref[...]
    )


# ------------------------------- wrapper -----------------------------------

def _round_up(v, m):
    return -(-v // m) * m


def preprocess_params(params):
    """One-time weight prep (transpose / cast / reshape) hoisted out of forward."""
    w1 = params["w1"]                    # [H, F]  (PyTorch layout)
    b1 = params["b1"]                    # [H]
    w2 = params["w2"]                    # [C, H]
    b2 = params["b2"]                    # [C]
    H, _ = w1.shape
    C = w2.shape[0]
    return dict(
        w1_t=jnp.asarray(w1).T.astype(jnp.bfloat16),        # [F, H]
        b1_r=jnp.asarray(b1).reshape(1, H).astype(jnp.float32),
        w2_t=jnp.asarray(w2).T.astype(jnp.bfloat16),        # [H, C]
        b2_r=jnp.asarray(b2).reshape(1, C).astype(jnp.float32),
    )


@jax.jit
def mlpkan_forward(x, prep):
    """MlpKan.forward on preprocessed params. Returns [B, classes] f32."""
    w1_t = prep["w1_t"]                  # [F, H] bf16
    b1_r = prep["b1_r"]                  # [1, H] f32
    w2_t = prep["w2_t"]                  # [H, C] bf16
    b2_r = prep["b2_r"]                  # [1, C] f32
    F, H = w1_t.shape
    C = w2_t.shape[1]

    x2 = x.reshape(-1, F)                # x.view(-1, feature_channel_num)
    B = x2.shape[0]

    # Batch tile: big enough to amortize per-step overhead, but for large B keep
    # >= 2 grid steps so both TensorCores are used on v7x.  TB is either the
    # full batch (legal block: equals array dim) or a multiple of 8.
    TB_MAX = 512
    if B <= TB_MAX:
        TB = B
    else:
        TB = min(TB_MAX, _round_up(pl.cdiv(B, 2), 8))
    grid = pl.cdiv(B, TB)                # ragged last tile handled by Pallas masking

    out = pl.pallas_call(
        _mlpkan_kernel,
        out_shape=jax.ShapeDtypeStruct((B, C), jnp.float32),
        grid_spec=pltpu.PrefetchScalarGridSpec(
            num_scalar_prefetch=0,
            grid=(grid,),
            in_specs=[
                pl.BlockSpec((TB, F), lambda i: (i, 0)),   # x tile
                pl.BlockSpec((F, H), lambda i: (0, 0)),    # W1^T
                pl.BlockSpec((1, H), lambda i: (0, 0)),    # b1
                pl.BlockSpec((H, C), lambda i: (0, 0)),    # W2^T
                pl.BlockSpec((1, C), lambda i: (0, 0)),    # b2
            ],
            out_specs=pl.BlockSpec((TB, C), lambda i: (i, 0)),
        ),
        compiler_params=pltpu.CompilerParams(
            dimension_semantics=("parallel",)),
    )(x2, w1_t, b1_r, w2_t, b2_r)

    return out


# --------------------------- params & reference ----------------------------

def init_params(key, init_features=64, classes=2):
    H = init_features // 2
    k1, k2, k3, k4 = jax.random.split(key, 4)

    def nrm(k, shape, scale=0.05):
        return (scale * jax.random.normal(k, shape)).astype(jnp.float32)

    return dict(
        w1=nrm(k1, (H, init_features)),   # Linear(F, F//2)
        b1=nrm(k2, (H,)),
        w2=nrm(k3, (classes, H)),         # Linear(F//2, classes)
        b2=nrm(k4, (classes,)),
    )


def mlpkan_ref(x, params):
    F = params["w1"].shape[1]
    x2 = x.reshape(-1, F).astype(jnp.float32)
    h = jnp.maximum(x2 @ params["w1"].T + params["b1"], 0.0)
    # Dropout(0.5) is identity at eval time.
    return h @ params["w2"].T + params["b2"]


# --------------------------------- main -------------------------------------

if __name__ == "__main__":
    key = jax.random.PRNGKey(0)
    k_param, k_x, k_x2 = jax.random.split(key, 3)

    init_features, classes = 64, 2

    params = init_params(k_param, init_features=init_features, classes=classes)
    prep = preprocess_params(params)

    # Small batch (single grid step, block == full array dims).
    B = 2
    x = jax.random.normal(k_x, (B, init_features), dtype=jnp.float32)
    out = jax.block_until_ready(mlpkan_forward(x, prep))
    ref = mlpkan_ref(x, params)
    np.testing.assert_allclose(np.asarray(out), np.asarray(ref),
                               rtol=2e-2, atol=2e-2)

    # Larger ragged batch: exercises multi-step parallel grid + boundary masking.
    B2 = 1030
    xb = jax.random.normal(k_x2, (B2, init_features), dtype=jnp.float32)
    outb = jax.block_until_ready(mlpkan_forward(xb, prep))
    refb = mlpkan_ref(xb, params)
    np.testing.assert_allclose(np.asarray(outb), np.asarray(refb),
                               rtol=2e-2, atol=2e-2)

    print("KERNEL_OK")
</pallas_src>

<mosaic_0001>
module attributes {stable_mosaic.version = 11 : i64} {
  func.func @_mlpkan_kernel(%arg0: i32, %arg1: memref<2x64xf32, #tpu.memory_space<vmem>>, %arg2: memref<64x32xbf16, #tpu.memory_space<vmem>>, %arg3: memref<1x32xf32, #tpu.memory_space<vmem>>, %arg4: memref<32x2xbf16, #tpu.memory_space<vmem>>, %arg5: memref<1x2xf32, #tpu.memory_space<vmem>>, %arg6: memref<2x2xf32, #tpu.memory_space<vmem>>) attributes {dimension_semantics = [#tpu.dimension_semantics<parallel>], iteration_bounds = array<i64: 1>, scalar_prefetch = 0 : i64, scratch_operands = 0 : i64, tpu.core_type = #tpu.core_type<tc>, window_params = [{transform_indices = @transform_0, window_bounds = array<i64: 2, 64>}, {pipeline_mode = #tpu.pipeline_mode<synchronous>, transform_indices = @transform_1, window_bounds = array<i64: 64, 32>}, {pipeline_mode = #tpu.pipeline_mode<synchronous>, transform_indices = @transform_2, window_bounds = array<i64: 1, 32>}, {pipeline_mode = #tpu.pipeline_mode<synchronous>, transform_indices = @transform_3, window_bounds = array<i64: 32, 2>}, {pipeline_mode = #tpu.pipeline_mode<synchronous>, transform_indices = @transform_4, window_bounds = array<i64: 1, 2>}, {transform_indices = @transform_5, window_bounds = array<i64: 2, 2>}]} {
    %c0 = arith.constant 0 : index
    %c0_0 = arith.constant 0 : index
    %0 = vector.load %arg1[%c0, %c0_0] : memref<2x64xf32, #tpu.memory_space<vmem>>, vector<2x64xf32>
    %1 = arith.truncf %0 : vector<2x64xf32> to vector<2x64xbf16>
    %c0_1 = arith.constant 0 : index
    %c0_2 = arith.constant 0 : index
    %2 = vector.load %arg2[%c0_1, %c0_2] : memref<64x32xbf16, #tpu.memory_space<vmem>>, vector<64x32xbf16>
    %cst = arith.constant dense<0.000000e+00> : vector<2x32xf32>
    %3 = tpu.matmul %1, %2, %cst {dimension_numbers = #tpu.dot_dimension_numbers<[1], [0], [0], [1], [0, 0, 1, 1], [], []>} : vector<2x64xbf16>, vector<64x32xbf16>, vector<2x32xf32> -> vector<2x32xf32>
    %c0_3 = arith.constant 0 : index
    %c0_4 = arith.constant 0 : index
    %4 = vector.load %arg3[%c0_3, %c0_4] : memref<1x32xf32, #tpu.memory_space<vmem>>, vector<1x32xf32>
    %5 = vector.broadcast %4 : vector<1x32xf32> to vector<2x32xf32>
    %6 = arith.addf %3, %5 : vector<2x32xf32>
    %cst_5 = arith.constant 0.000000e+00 : f32
    %7 = vector.broadcast %cst_5 : f32 to vector<2x32xf32>
    %8 = arith.maximumf %6, %7 : vector<2x32xf32>
    %9 = arith.truncf %8 : vector<2x32xf32> to vector<2x32xbf16>
    %c0_6 = arith.constant 0 : index
    %c0_7 = arith.constant 0 : index
    %10 = vector.load %arg4[%c0_6, %c0_7] : memref<32x2xbf16, #tpu.memory_space<vmem>>, vector<32x2xbf16>
    %cst_8 = arith.constant dense<0.000000e+00> : vector<2x2xf32>
    %11 = tpu.matmul %9, %10, %cst_8 {dimension_numbers = #tpu.dot_dimension_numbers<[1], [0], [0], [1], [0, 0, 1, 1], [], []>} : vector<2x32xbf16>, vector<32x2xbf16>, vector<2x2xf32> -> vector<2x2xf32>
    %c0_9 = arith.constant 0 : index
    %c0_10 = arith.constant 0 : index
    %12 = vector.load %arg5[%c0_9, %c0_10] : memref<1x2xf32, #tpu.memory_space<vmem>>, vector<1x2xf32>
    %13 = vector.broadcast %12 : vector<1x2xf32> to vector<2x2xf32>
    %14 = arith.addf %11, %13 : vector<2x2xf32>
    %c0_11 = arith.constant 0 : index
    %c0_12 = arith.constant 0 : index
    %15 = vector.load %arg6[%c0_11, %c0_12] : memref<2x2xf32, #tpu.memory_space<vmem>>, vector<2x2xf32>
    tpu.vector_store %arg6[%c0_11, %c0_12], %14 {strides = array<i32>} : memref<2x2xf32, #tpu.memory_space<vmem>>, vector<2x2xf32>,
    return
  }
  func.func @transform_0(%arg0: i32) -> (i32, i32) {
    %c0_i32 = arith.constant 0 : i32
    %c0_i32_0 = arith.constant 0 : i32
    return %arg0, %c0_i32 : i32, i32
  }
  func.func @transform_1(%arg0: i32) -> (i32, i32) {
    %c0_i32 = arith.constant 0 : i32
    %c0_i32_0 = arith.constant 0 : i32
    %c0_i32_1 = arith.constant 0 : i32
    return %c0_i32, %c0_i32_0 : i32, i32
  }
  func.func @transform_2(%arg0: i32) -> (i32, i32) {
    %c0_i32 = arith.constant 0 : i32
    %c0_i32_0 = arith.constant 0 : i32
    %c0_i32_1 = arith.constant 0 : i32
    return %c0_i32, %c0_i32_0 : i32, i32
  }
  func.func @transform_3(%arg0: i32) -> (i32, i32) {
    %c0_i32 = arith.constant 0 : i32
    %c0_i32_0 = arith.constant 0 : i32
    %c0_i32_1 = arith.constant 0 : i32
    return %c0_i32, %c0_i32_0 : i32, i32
  }
  func.func @transform_4(%arg0: i32) -> (i32, i32) {
    %c0_i32 = arith.constant 0 : i32
    %c0_i32_0 = arith.constant 0 : i32
    %c0_i32_1 = arith.constant 0 : i32
    return %c0_i32, %c0_i32_0 : i32, i32
  }
  func.func @transform_5(%arg0: i32) -> (i32, i32) {
    %c0_i32 = arith.constant 0 : i32
    %c0_i32_0 = arith.constant 0 : i32
    return %arg0, %c0_i32 : i32, i32
  }
}

</mosaic_0001>

<bundles_post_ra>
// kernel: mlpkan_forward.1
= control target key start
LH: loop header
LB: loop body
LE: loop exit
PB: predicated region body
PF: predicated region fallthrough
CT: control target
= control target key end

     0   :  { %v261_v1 = vmov 0.0   ;;  %vm262_vm0 = vmmov 0   ;;  %s324_s0 = inlined_call_operand.vmem [shape: f32[2,64], index: 0, kind: input, shape index: {}]   ;;  %s325_s1 = inlined_call_operand.vmem [shape: bf16[64,32], index: 1, kind: input, shape index: {}]   ;;  %s326_s2 = inlined_call_operand.vmem [shape: f32[1,32], index: 2, kind: input, shape index: {}]   ;;  %s327_s3 = inlined_call_operand.vmem [shape: bf16[32,2], index: 3, kind: input, shape index: {}]   ;;  %s328_s4 = inlined_call_operand.vmem [shape: f32[1,2], index: 4, kind: input, shape index: {}]   ;;  %s329_s5 = inlined_call_operand.hbm [shape: f32[2,2], index: 5, kind: output, shape index: {}]  }
   0x1   :  { %v233_v0 = vld [vmem:[%s325_s1 + $0x18] sm:$0xff]   ;;  %210 = vmatprep.subr.bf16.mxu0 %v261_v1  ;;  %222 = vmatprep.subr.bf16.mxu1 %v261_v1  ;;  %v234_v2 = vld [vmem:[%s325_s1 + $0x10] sm:$0xff]   ;;  %v235_v3 = vld [vmem:[%s325_s1 + $0x8] sm:$0xff]  }
   0x2   :  { %211 = vmatpush3.bf16.msra.mxu0 %v233_v0  ;;  %218 = vmatprep.mubr.msk.bf16.mxu0 %vm262_vm0, %v261_v1 }
   0x3   :  { %212 = vmatprep.subr.bf16.mxu0 %v261_v1  ;;  %226 = vmatprep.mubr.msk.bf16.mxu1 %vm262_vm0, %v261_v1 }
   0x6   :  { %213 = vmatpush3.bf16.msra.mxu0 %v234_v2 }
   0x7   :  { %10 = vsyncpa [#allocation3], 0  ;;  %214 = vmatprep.subr.bf16.mxu0 %v261_v1  ;;  %v236_v4 = vld [vmem:[%s325_s1] sm:$0xff]   ;;  %vm63_vm1 = vcmask 523264   ;;  %v237_v7 = vld [vmem:[%s327_s3 + $0x8] sm:$0xff]   ;;  %vm132_vm2 = vcmask 261120  }
   0x8   :  { %v22_v5 = vld [vmem:[%s324_s0] sm:$0x3]  ;;  %223 = vmatpush3.bf16.msra.mxu1 %v237_v7  ;;  %s263_s9 = smov [#allocation2]   ;;  %vm176_vm3 = vcmask 9216  }
   0x9   :  { %v23_v6 = vpack.c.bf16 %v22_v5, %v22_v5  ;;  %224 = vmatprep.subr.bf16.mxu1 %v261_v1  ;;  %v238_v8 = vld [vmem:[%s327_s3] sm:$0xff]   ;;  %s184_s3 = sshll.u32 %s263_s9, 4  ;;  %s185_s3 = int_to_ptr.vmem [resolvable:$true] %s184_s3 }
   0xa   :  { %215 = vmatpush3.bf16.msra.mxu0 %v235_v3  ;;  %v192_v9 = vld [vmem:[%s326_s2] ss:$0 sm:$0xff]  ;;  %s239_s2 = scalar_lea.vmem %s185_s3, 32  ;;  %p244_p1 = scmp.lt.s32.totalorder %s185_s3, %s185_s3 }
   0xb   :  { %216 = vmatprep.subr.bf16.mxu0 %v261_v1  ;;  %v198_v17 = vld [vmem:[%s328_s4] ss:$0 sm:$0xff]  ;;  %p240_p0 = scmp.ne.s32.totalorder %s185_s3, %s239_s2  ;;  %p245_p2 = scmp.lt.s32.totalorder %s239_s2, %s239_s2 }
   0xc   :  { %225 = vmatpush3.bf16.msra.mxu1 %v238_v8 }
   0xd   :  { %p246_p3 = por %p245_p2, %p244_p1 }
   0xe   :  { %217 = vmatpush3.bf16.msra.mxu0 %v236_v4 }
   0xf   :  { %p247_p4 = pnand %p246_p3, %p240_p0 }
  0x11   :  { %219 = vmatmul.mubr.msk.bf16.vlgmr.msra.gmra.mxu0 %vm63_vm1, %v23_v6 }
  0xd1   :  { %v101_v10 = vpop.f32.mrf.mxu0 }
  0xd2   :  { %v102_v11 = vadd.f32 %v192_v9, %v101_v10 }
  0xd3   :  { %v220_v12 = vpop.f32.mrf.mxu0 }
  0xd4   :  { %v107_v13 = vmax.f32 %v102_v11, 0.0 }
  0xd5   :  { %v104_v14 = vpop.f32.mrf.mxu0 }
  0xd6   :  { %v108_v15 = vpack.c.bf16 %v107_v13, %v107_v13 }
  0xd7   :  { %v221_v16 = vpop.f32.mrf.mxu0 }
  0xd8   :  { %227 = vmatmul.mubr.msk.bf16.vlgmr.msra.gmra.mxu1 %vm132_vm2, %v108_v15 }
 0x198   :  { %v170_v18 = vpop.f32.mrf.mxu1 }
 0x199   :  { %v171_v19 = vadd.f32 %v198_v17, %v170_v18 }
 0x19a   :  { %v228_v20 = vpop.f32.mrf.mxu1 }
 0x19b   :  { %177 = vst.msk [vmem:[#allocation2] sm:$0x3] %vm176_vm3, %v171_v19 }
 0x19c   :  { %v173_v21 = vpop.f32.mrf.mxu1 }
 0x19d   :  { %250 = shalt.err (!%p247_p4)
}
 0x19e   :  { %187 = dma.vmem_to_hbm [thread:$0]  %s185_s3, 32, %s329_s5, [#allocation3]   ;;  %v229_v22 = vpop.f32.mrf.mxu1 }
 0x19f   :  { %259 = dma.done.wait [#allocation3], 32  }
 0x1a0   :  { %260 = vsyncadd [#allocation3], 4294967264 }
 0x1a1   :  { %191 = vsyncpa [#allocation3], 1 }

</bundles_post_ra>
